<compile_context>
chip_gen: v7x
topology: tpu7x:2x2x1
jax: 0.10.0
libtpu: 0.0.40
codegen_flags: <defaults>
</compile_context>

<pallas_src>
import functools

import jax
import jax.numpy as jnp
from jax.experimental import pallas as pl
from jax.experimental.pallas import tpu as pltpu

_BN_EPS = 1e-5


# ----------------------------------------------------------------------------
# Pallas kernels
# ----------------------------------------------------------------------------
def _gemm_kernel(x_ref, w_ref, b_ref, o_ref, *, relu):
    acc = jnp.dot(x_ref[...], w_ref[...], preferred_element_type=jnp.float32)
    acc = acc + b_ref[...]
    if relu:
        acc = jnp.maximum(acc, 0.0)
    o_ref[...] = acc.astype(o_ref.dtype)


def _gemm_res_kernel(x_ref, w_ref, b_ref, r_ref, o_ref, *, relu):
    acc = jnp.dot(x_ref[...], w_ref[...], preferred_element_type=jnp.float32)
    acc = acc + b_ref[...] + r_ref[...].astype(jnp.float32)
    if relu:
        acc = jnp.maximum(acc, 0.0)
    o_ref[...] = acc.astype(o_ref.dtype)


def _conv3x3_s1_kernel(x_ref, w_ref, b_ref, o_ref, *, wp, q, relu):
    # x_ref: (1, Hp*Wp, C)  w_ref: (9, C, TN)  b_ref: (1, TN)  o_ref: (1, Q, TN)
    # Accumulate the 9 taps from shifted row-windows of the padded, flattened
    # input (patches are formed in VMEM; nothing is expanded in HBM).
    tn = o_ref.shape[-1]
    acc = jnp.zeros((q, tn), jnp.float32)
    for t in range(9):
        off = (t // 3) * wp + (t % 3)
        acc = acc + jnp.dot(x_ref[0, off:off + q, :], w_ref[t],
                            preferred_element_type=jnp.float32)
    acc = acc + b_ref[...]
    if relu:
        acc = jnp.maximum(acc, 0.0)
    o_ref[0] = acc.astype(o_ref.dtype)


def _maxpool_kernel(p00_ref, p01_ref, p10_ref, p11_ref, o_ref, *, oh, ow):
    # Each phase ref: (1, H//2+1, W//2+1, C). 3x3 stride-2 max over 9 taps,
    # each tap is a static window of one stride-phase.
    refs = ((p00_ref, p01_ref), (p10_ref, p11_ref))
    m = None
    for di in range(3):
        for dj in range(3):
            pr = refs[di % 2][dj % 2]
            v = pr[0, di // 2:di // 2 + oh, dj // 2:dj // 2 + ow, :]
            m = v if m is None else jnp.maximum(m, v)
    o_ref[0] = m


# ----------------------------------------------------------------------------
# Pallas wrappers
# ----------------------------------------------------------------------------
def _pick_tiles(m, k, oc):
    tn = 256 if oc % 256 == 0 else (128 if oc % 128 == 0 else oc)
    if m >= 1024 and m % 512 == 0 and k * 512 * 2 <= (1 << 21):
        tm = 512
    elif m >= 256 and m % 256 == 0:
        tm = 256
    elif m % 128 == 0:
        tm = 128
    else:
        tm = m                                   # small M: one full block
    # Keep >= 2 programs when cheaply possible so both v7x TensorCores work.
    if (m // tm) * (oc // tn) == 1 and m >= 16 and m % 16 == 0:
        tm = m // 2
    return tm, tn


def gemm_bias_act(x2d, w2d, bias, residual=None, relu=True):
    """out = act(x2d @ w2d + bias [+ residual]); bf16 in/out, f32 accumulate."""
    m, k = x2d.shape
    oc = w2d.shape[1]
    tm, tn = _pick_tiles(m, k, oc)

    in_specs = [
        pl.BlockSpec((tm, k), lambda i, j: (i, 0)),
        pl.BlockSpec((k, tn), lambda i, j: (0, j)),
        pl.BlockSpec((1, tn), lambda i, j: (0, j)),
    ]
    args = [x2d, w2d, bias]
    if residual is not None:
        in_specs.append(pl.BlockSpec((tm, tn), lambda i, j: (i, j)))
        args.append(residual)
        kernel = functools.partial(_gemm_res_kernel, relu=relu)
    else:
        kernel = functools.partial(_gemm_kernel, relu=relu)

    return pl.pallas_call(
        kernel,
        out_shape=jax.ShapeDtypeStruct((m, oc), jnp.bfloat16),
        grid=(m // tm, oc // tn),
        in_specs=in_specs,
        out_specs=pl.BlockSpec((tm, tn), lambda i, j: (i, j)),
        compiler_params=pltpu.CompilerParams(
            dimension_semantics=("parallel", "parallel")),
    )(*args)


def conv3x3_s1(x_nhwc, w9, bias, relu=True):
    """Fused 3x3 stride-1 pad-1 conv + bias + ReLU; taps formed in VMEM."""
    n, h, w, c = x_nhwc.shape
    oc = w9.shape[-1]
    hp, wp = h + 2, w + 2
    q = (h - 1) * wp + w                         # rows of the flat-with-gaps output
    xflat = jnp.pad(x_nhwc, ((0, 0), (1, 1), (1, 1), (0, 0))).reshape(n, hp * wp, c)
    tn = 256 if oc % 256 == 0 else (128 if oc % 128 == 0 else oc)

    out = pl.pallas_call(
        functools.partial(_conv3x3_s1_kernel, wp=wp, q=q, relu=relu),
        out_shape=jax.ShapeDtypeStruct((n, q, oc), jnp.bfloat16),
        grid=(n, oc // tn),
        in_specs=[
            pl.BlockSpec((1, hp * wp, c), lambda b, j: (b, 0, 0)),
            pl.BlockSpec((9, c, tn), lambda b, j: (0, 0, j)),
            pl.BlockSpec((1, tn), lambda b, j: (0, j)),
        ],
        out_specs=pl.BlockSpec((1, q, tn), lambda b, j: (b, 0, j)),
        compiler_params=pltpu.CompilerParams(
            dimension_semantics=("parallel", "parallel")),
    )(xflat, w9, bias)

    # Valid output rows are q = oh*Wp + ow with ow < W; drop the gap rows.
    out = jnp.pad(out, ((0, 0), (0, h * wp - q), (0, 0)))
    return out.reshape(n, h, wp, oc)[:, :, :w, :]


def maxpool_3x3_s2(x_nhwc):
    n, h, w, c = x_nhwc.shape
    oh, ow = h // 2, w // 2
    xpad = jnp.pad(x_nhwc, ((0, 0), (1, 1), (1, 1), (0, 0)),
                   constant_values=-jnp.inf)
    # The 4 stride-2 phases of the padded input; each tap (di,dj) is a static
    # window of phase (di%2, dj%2) inside the kernel.
    phases = [xpad[:, a::2, b::2, :] for a in range(2) for b in range(2)]
    ph, pw = phases[0].shape[1], phases[0].shape[2]
    spec = pl.BlockSpec((1, ph, pw, c), lambda b: (b, 0, 0, 0))
    return pl.pallas_call(
        functools.partial(_maxpool_kernel, oh=oh, ow=ow),
        out_shape=jax.ShapeDtypeStruct((n, oh, ow, c), x_nhwc.dtype),
        grid=(n,),
        in_specs=[spec, spec, spec, spec],
        out_specs=pl.BlockSpec((1, oh, ow, c), lambda b: (b, 0, 0, 0)),
        compiler_params=pltpu.CompilerParams(dimension_semantics=("parallel",)),
    )(*phases)


def im2col(x_nhwc, kh, kw, stride, pad):
    # Only used for the 7x7 stem and the three 3x3 stride-2 convs (small data).
    xpad = jnp.pad(x_nhwc, ((0, 0), (pad, pad), (pad, pad), (0, 0)))
    n, hp, wp, c = xpad.shape
    oh = (hp - kh) // stride + 1
    ow = (wp - kw) // stride + 1
    cols = []
    for i in range(kh):
        for j in range(kw):
            cols.append(xpad[:, i:i + stride * (oh - 1) + 1:stride,
                             j:j + stride * (ow - 1) + 1:stride, :])
    patches = jnp.stack(cols, axis=3)            # (N, OH, OW, kh*kw, C)
    return patches.reshape(n * oh * ow, kh * kw * c), (n, oh, ow)


def conv_bn_act(x_nhwc, cp, residual=None, relu=True):
    """Dispatch one folded conv+BN (+residual) (+ReLU) to a Pallas kernel."""
    kind = cp["kind"]
    if kind == "1x1":
        if cp["stride"] > 1:
            s = cp["stride"]
            x_nhwc = x_nhwc[:, ::s, ::s, :]
        n, h, w, c = x_nhwc.shape
        x2d = x_nhwc.reshape(n * h * w, c)
        if cp["kpad"]:
            x2d = jnp.pad(x2d, ((0, 0), (0, cp["kpad"])))
        r2d = None
        if residual is not None:
            r2d = residual.reshape(n * h * w, residual.shape[-1])
        out = gemm_bias_act(x2d, cp["w"], cp["b"], residual=r2d, relu=relu)
        return out.reshape(n, h, w, -1)
    if kind == "3x3s1":
        return conv3x3_s1(x_nhwc, cp["w"], cp["b"], relu=relu)
    # generic path (7x7 s2 stem, 3x3 s2): small im2col + GEMM
    patches, (n, oh, ow) = im2col(x_nhwc, cp["kh"], cp["kw"], cp["stride"], cp["pad"])
    if cp["kpad"]:
        patches = jnp.pad(patches, ((0, 0), (0, cp["kpad"])))
    out = gemm_bias_act(patches, cp["w"], cp["b"], relu=relu)
    return out.reshape(n, oh, ow, -1)


# ----------------------------------------------------------------------------
# Parameters (deterministic synthetic init — no checkpoint loading)
# ----------------------------------------------------------------------------
def _conv_w(key, oc, ic, kh, kw):
    fan_in = ic * kh * kw
    return jax.random.normal(key, (oc, ic, kh, kw), jnp.float32) * (2.0 / fan_in) ** 0.5


def _bn_params(oc):
    # (gamma, beta, running_mean, running_var) — eval-mode identity stats.
    return (jnp.ones((oc,), jnp.float32), jnp.zeros((oc,), jnp.float32),
            jnp.zeros((oc,), jnp.float32), jnp.ones((oc,), jnp.float32))


def _make_bottleneck(key, in_c, width, stride):
    k1, k2, k3, k4 = jax.random.split(key, 4)
    p = {
        "conv1": _conv_w(k1, width, in_c, 1, 1), "bn1": _bn_params(width),
        "conv2": _conv_w(k2, width, width, 3, 3), "bn2": _bn_params(width),
        "conv3": _conv_w(k3, width * 4, width, 1, 1), "bn3": _bn_params(width * 4),
        "stride": stride,
    }
    if stride != 1 or in_c != width * 4:
        p["down_w"] = _conv_w(k4, width * 4, in_c, 1, 1)
        p["down_bn"] = _bn_params(width * 4)
    return p


def make_resnet50_params(key):
    layer_cfg = [(64, 3, 1), (128, 4, 2), (256, 6, 2), (512, 3, 2)]
    n_blocks = sum(nb for _, nb, _ in layer_cfg)
    keys = jax.random.split(key, 1 + n_blocks)
    params = {"conv1": _conv_w(keys[0], 64, 3, 7, 7), "bn1": _bn_params(64)}
    in_c, ki = 64, 1
    for li, (width, nblocks, stride) in enumerate(layer_cfg, start=1):
        blocks = []
        for b in range(nblocks):
            s = stride if b == 0 else 1
            blocks.append(_make_bottleneck(keys[ki], in_c, width, s))
            ki += 1
            in_c = width * 4
        params[f"layer{li}"] = blocks
    return params


def _fold_bn(w_oihw, bn):
    gamma, beta, mean, var = bn
    scale = gamma / jnp.sqrt(var + _BN_EPS)
    return w_oihw * scale[:, None, None, None], beta - mean * scale


def _prep_conv(w_oihw, bn, stride, pad):
    """Fold BN into the weights, transpose/pad once, cast to bf16."""
    oc, ic, kh, kw = w_oihw.shape
    w, b = _fold_bn(w_oihw, bn)
    bias = b.reshape(1, oc).astype(jnp.float32)
    if kh == 1 and kw == 1:
        w2 = jnp.transpose(w.reshape(oc, ic), (1, 0))          # (IC, OC)
        kpad = (-ic) % 128
        if kpad:
            w2 = jnp.pad(w2, ((0, kpad), (0, 0)))
        return {"kind": "1x1", "w": w2.astype(jnp.bfloat16), "b": bias,
                "stride": stride, "kpad": kpad}
    if kh == 3 and kw == 3 and stride == 1:
        w9 = jnp.transpose(w, (2, 3, 1, 0)).reshape(9, ic, oc)  # (tap, IC, OC)
        return {"kind": "3x3s1", "w": w9.astype(jnp.bfloat16), "b": bias}
    w2 = jnp.transpose(w, (2, 3, 1, 0)).reshape(kh * kw * ic, oc)
    kpad = (-(kh * kw * ic)) % 128
    if kpad:
        w2 = jnp.pad(w2, ((0, kpad), (0, 0)))
    return {"kind": "im2col", "w": w2.astype(jnp.bfloat16), "b": bias,
            "kh": kh, "kw": kw, "stride": stride, "pad": pad, "kpad": kpad}


def prepare_params(raw):
    prep = {"conv1": _prep_conv(raw["conv1"], raw["bn1"], stride=2, pad=3)}
    for li in range(1, 5):
        blocks = []
        for bp in raw[f"layer{li}"]:
            s = bp["stride"]
            pb = {
                "conv1": _prep_conv(bp["conv1"], bp["bn1"], 1, 0),
                "conv2": _prep_conv(bp["conv2"], bp["bn2"], s, 1),
                "conv3": _prep_conv(bp["conv3"], bp["bn3"], 1, 0),
            }
            if "down_w" in bp:
                pb["down"] = _prep_conv(bp["down_w"], bp["down_bn"], s, 0)
            blocks.append(pb)
        prep[f"layer{li}"] = blocks
    return prep


# ----------------------------------------------------------------------------
# Forward (mirrors ResNet50FeatureExtractor.forward)
# ----------------------------------------------------------------------------
def _bottleneck_forward(x, pb):
    identity = x
    out = conv_bn_act(x, pb["conv1"], relu=True)
    out = conv_bn_act(out, pb["conv2"], relu=True)
    if "down" in pb:
        identity = conv_bn_act(x, pb["down"], relu=False)
    # conv3 + bn3 + residual add + relu fused in one GEMM kernel.
    return conv_bn_act(out, pb["conv3"], residual=identity, relu=True)


def resnet50_feature_extractor(x_nchw, prep, blocks=(1, 2, 3, 4)):
    x = jnp.transpose(x_nchw, (0, 2, 3, 1)).astype(jnp.bfloat16)   # NCHW -> NHWC
    x = conv_bn_act(x, prep["conv1"], relu=True)
    x = maxpool_3x3_s2(x)
    feats = []
    for li in range(1, 5):
        for pb in prep[f"layer{li}"]:
            x = _bottleneck_forward(x, pb)
        if li in blocks:
            feats.append(jnp.transpose(x, (0, 3, 1, 2)).astype(jnp.float32))
    return feats


# ----------------------------------------------------------------------------
if __name__ == "__main__":
    key = jax.random.PRNGKey(0)
    pkey, xkey = jax.random.split(key)
    raw = make_resnet50_params(pkey)
    prep = prepare_params(raw)

    # Small input consistent with ResNet50: NCHW, 3 channels, 64x64 spatial.
    x = jax.random.normal(xkey, (2, 3, 64, 64), jnp.float32)

    feats = resnet50_feature_extractor(x, prep, blocks=(1, 2, 3, 4))
    feats = jax.block_until_ready(feats)

    expected = [(2, 256, 16, 16), (2, 512, 8, 8), (2, 1024, 4, 4), (2, 2048, 2, 2)]
    got = [tuple(map(int, f.shape)) for f in feats]
    assert got == expected, got
    assert all(bool(jnp.isfinite(f).all()) for f in feats)
    print("KERNEL_OK")
</pallas_src>

<mosaic_0001>
module attributes {stable_mosaic.version = 11 : i64} {
  func.func @_gemm_kernel(%arg0: i32, %arg1: i32, %arg2: memref<512x256xbf16, #tpu.memory_space<vmem>>, %arg3: memref<256x64xbf16, #tpu.memory_space<vmem>>, %arg4: memref<1x64xf32, #tpu.memory_space<vmem>>, %arg5: memref<512x64xbf16, #tpu.memory_space<vmem>>) attributes {dimension_semantics = [#tpu.dimension_semantics<parallel>, #tpu.dimension_semantics<parallel>], iteration_bounds = array<i64: 4, 1>, scalar_prefetch = 0 : i64, scratch_operands = 0 : i64, tpu.core_type = #tpu.core_type<tc>, window_params = [{transform_indices = @transform_0, window_bounds = array<i64: 512, 256>}, {transform_indices = @transform_1, window_bounds = array<i64: 256, 64>}, {transform_indices = @transform_2, window_bounds = array<i64: 1, 64>}, {transform_indices = @transform_3, window_bounds = array<i64: 512, 64>}]} {
    %c0 = arith.constant 0 : index
    %c0_0 = arith.constant 0 : index
    %0 = vector.load %arg2[%c0, %c0_0] : memref<512x256xbf16, #tpu.memory_space<vmem>>, vector<512x256xbf16>
    %c0_1 = arith.constant 0 : index
    %c0_2 = arith.constant 0 : index
    %1 = vector.load %arg3[%c0_1, %c0_2] : memref<256x64xbf16, #tpu.memory_space<vmem>>, vector<256x64xbf16>
    %cst = arith.constant dense<0.000000e+00> : vector<512x64xf32>
    %2 = tpu.matmul %0, %1, %cst {dimension_numbers = #tpu.dot_dimension_numbers<[1], [0], [0], [1], [0, 0, 1, 1], [], []>} : vector<512x256xbf16>, vector<256x64xbf16>, vector<512x64xf32> -> vector<512x64xf32>
    %c0_3 = arith.constant 0 : index
    %c0_4 = arith.constant 0 : index
    %3 = vector.load %arg4[%c0_3, %c0_4] : memref<1x64xf32, #tpu.memory_space<vmem>>, vector<1x64xf32>
    %4 = vector.broadcast %3 : vector<1x64xf32> to vector<512x64xf32>
    %5 = arith.addf %2, %4 : vector<512x64xf32>
    %cst_5 = arith.constant 0.000000e+00 : f32
    %6 = vector.broadcast %cst_5 : f32 to vector<512x64xf32>
    %7 = arith.maximumf %5, %6 : vector<512x64xf32>
    %8 = arith.truncf %7 : vector<512x64xf32> to vector<512x64xbf16>
    %c0_6 = arith.constant 0 : index
    %c0_7 = arith.constant 0 : index
    %9 = vector.load %arg5[%c0_6, %c0_7] : memref<512x64xbf16, #tpu.memory_space<vmem>>, vector<512x64xbf16>
    tpu.vector_store %arg5[%c0_6, %c0_7], %8 {strides = array<i32>} : memref<512x64xbf16, #tpu.memory_space<vmem>>, vector<512x64xbf16>,
    return
  }
  func.func @transform_0(%arg0: i32, %arg1: i32) -> (i32, i32) {
    %c0_i32 = arith.constant 0 : i32
    %c0_i32_0 = arith.constant 0 : i32
    return %arg0, %c0_i32 : i32, i32
  }
  func.func @transform_1(%arg0: i32, %arg1: i32) -> (i32, i32) {
    %c0_i32 = arith.constant 0 : i32
    %c0_i32_0 = arith.constant 0 : i32
    return %c0_i32, %arg1 : i32, i32
  }
  func.func @transform_2(%arg0: i32, %arg1: i32) -> (i32, i32) {
    %c0_i32 = arith.constant 0 : i32
    %c0_i32_0 = arith.constant 0 : i32
    return %c0_i32, %arg1 : i32, i32
  }
  func.func @transform_3(%arg0: i32, %arg1: i32) -> (i32, i32) {
    %c0_i32 = arith.constant 0 : i32
    return %arg0, %arg1 : i32, i32
  }
}

</mosaic_0001>

<bundles_post_ra>
// kernel: tpu_custom_call.1
= control target key start
LH: loop header
LB: loop body
LE: loop exit
PB: predicated region body
PF: predicated region fallthrough
CT: control target
= control target key end

     0   :  { %8 = vsyncpa [#allocation3], 0  ;;  %s2555_s0 = inlined_call_operand.hbm [shape: bf16[2048,256], index: 0, kind: input, shape index: {}]   ;;  %s2556_s1 = inlined_call_operand.vmem [shape: bf16[256,64], index: 1, kind: input, shape index: {}]   ;;  %s2557_s2 = inlined_call_operand.vmem [shape: f32[1,64], index: 2, kind: input, shape index: {}]   ;;  %s2558_s3 = inlined_call_operand.vmem [shape: bf16[2048,64], index: 3, kind: output, shape index: {}]  }
   0x1   :  { %10 = vsyncpa [#allocation3 + $0x1], 0  ;;  %s2087_s12 = smov 0   ;;  %s2089_s13 = smov 0  }
   0x2   :  { %s2091_s14 = smov 0   ;;  %s2093_s15 = smov 0  }
   0x3   :  { %s2095_s16 = smov 0   ;;  %s2097_s17 = smov 0  }
   0x4 LB: > { %s1552_s18 = sadd.s32 4294967295, %s2061_s17   ;;  %s28_s19 = sadd.s32 1, %s2057_s16  ;;  %s2061_s17 = sphi %s2097_s17, %s16_s17   ;;  %s2057_s16 = sphi %s2095_s16, %s2566_s16   ;;  %s2053_s15 = sphi %s2093_s15, %s2565_s15   ;;  %s2049_s14 = sphi %s2091_s14, %s2564_s14   ;;  %s2045_s13 = sphi %s2089_s13, %s2563_s13   ;;  %s2041_s12 = sphi %s2087_s12, %s2562_s12  }
   0x5   : > { %p30_p0 = scmp.ge.s32.totalorder %s28_s19, 4  ;;  %s35_s20 = sadd.s32 1, %s2049_s14 }
   0x6   : > { %p42_p1 = scmp.ne.s32.totalorder %s2049_s14, %s2045_s13  ;;  %p43_p2 = scmp.eq.s32.totalorder %s2061_s17, 0 }
   0x7   : > { %s2568_s19 = smov (%p30_p0, %s28_s19), 0  ;;  %p48_p4 = scmp.ne.s32.totalorder %s2045_s13, %s2041_s12 }
   0x8   : > { %p2123_p3 = por %p43_p2, %p42_p1  ;;  %s32_s22 = ssub.s32 %s2057_s16, %s2568_s19 }
   0x9   : > { %p49_p5 = scmp.eq.s32.totalorder %s1552_s18, 0  ;;  %p33_p6 = scmp.eq.s32.totalorder %s32_s22, 0 }
   0xa   : > { %p1817_p8 = scmp.lt.s32.totalorder %s2061_s17, 4  ;;  %s165_s25 = sand.u32 1, %s2049_s14  }
   0xb   : > { %p2130_p7 = por %p49_p5, %p48_p4  ;;  %s1714_s26 = sshll.u32 %s2057_s16, 13 }
   0xc   : > { %s2136_s24 = scalar_select %p33_p6, %s2049_s14, %s35_s20  }
   0xd   : > { %s1558_s27 = sshll.u32 %s165_s25, 9  ;;  %s2143_s30 = scalar_lea.hbm %s2555_s0, %s1714_s26 }
   0xe   : > { %s169_s4 = scalar_lea.vmem [#allocation2], %s1558_s27  ;;  %p2147_p9 = pnand %p1817_p8, %p2123_p3 }
   0xf   : > { %s177_s5 = sshll.u32 %s169_s4, 4  ;;  %s2153_s7 = scalar_lea.sflag [#allocation3], %s165_s25  ;;  %s2151_s5 = int_to_ptr.vmem [resolvable:$true] %s177_s5 }
  0x10   : > { %s1981_s8 = scalar_lea.hbm %s2143_s30, 8192  ;;  %p1983_p11 = pneg %p2147_p9 }
  0x11   : > { %p1982_p10 = scmp.ne.s32.totalorder %s2143_s30, %s1981_s8  ;;  %s1986_s11 = scalar_lea.hbm %s2555_s0, 32768 }
  0x12   : > { %p1987_p0 = scmp.lt.u32.totalorder %s2143_s30, %s2555_s0  ;;  %p1988_p1 = scmp.lt.u32.totalorder %s1986_s11, %s1981_s8 }
  0x13   : > { %p1984_p12 = pnand %p1983_p11, %p1982_p10  ;;  %p1990_p3 = scmp.lt.u32.totalorder %s1981_s8, %s2143_s30 }
  0x14   : > { %p1989_p2 = por %p1988_p1, %p1987_p0 }
  0x15   : > { %p1985_p13 = pneg %p1984_p12 }
  0x16   : > { %p1991_p4 = por %p1990_p3, %p1989_p2 }
  0x18   : > { %p1992_p5 = pnand %p1991_p4, %p1985_p13 }
  0x1a   : > { %1995 = shalt.err (!%p1992_p5)
}
  0x1b   : > { %s1996_s20 = scalar_lea.vmem %s2151_s5, 8192  ;;  %s2063_s21 = smov [#allocation2]  }
  0x1c   : > { %p1997_p6 = scmp.ne.s32.totalorder %s2151_s5, %s1996_s20  ;;  %s2001_s22 = sshll.u32 %s2063_s21, 4  ;;  %s2002_s22 = int_to_ptr.vmem [resolvable:$false] %s2001_s22 }
  0x1d   : > { %s2003_s25 = scalar_lea.vmem %s2002_s22, 16384  ;;  %p2004_p12 = scmp.lt.s32.totalorder %s2151_s5, %s2002_s22 }
  0x1e   : > { %p1999_p8 = pnand %p1997_p6, %p1983_p11  ;;  %p2005_p0 = scmp.lt.s32.totalorder %s2003_s25, %s1996_s20 }
  0x20   : > { %p2000_p10 = pneg %p1999_p8  ;;  %p2006_p1 = por %p2005_p0, %p2004_p12 }
  0x22   : > { %p2007_p2 = pnand %p2006_p1, %p2000_p10 }
  0x24   : > { %2010 = shalt.err (!%p2007_p2)
}
  0x25   : > { %s2064_s26 = smov 128   ;;  %s2065_s27 = smov 8  }
  0x26   : > { %1816 = dma.hbm_to_vmem [thread:$0]  (!%p2147_p9), %s2143_s30, 8192, %s2151_s5, %s2153_s7, %s2064_s26, %s2064_s26, %s2065_s27  }
  0x27   : > { %p1562_p11 = scmp.ge.s32.totalorder %s2061_s17, 1  ;;  %p185_p13 = scmp.lt.s32.totalorder %s2061_s17, 5 }
  0x29   : > { %p186_p3 = pnand %p1562_p11, %p185_p13 }
  0x2a   : > { %s191_s28 = sand.u32 (!%p186_p3), 1, %s2045_s13  }
  0x2b   : > { %189 = sbr.rel (%p186_p3) target bundleno = 457 (0x1c9), region = 32  ;;  %s1563_s29 = sshll.u32 (!%p186_p3), %s191_s28, 9 }
  0x2c   : > { %s192_s4 = scalar_lea.sflag (!%p186_p3), [#allocation3], %s191_s28  ;;  %s2184_s8 = scalar_lea.vmem (!%p186_p3), [#allocation2], %s1563_s29 }
  0x32   : > { %2036 = dma.done.wait (%p2130_p7), %s192_s4, 8192  }
  0x33   : > { %2038 = vsyncadd (%p2130_p7), %s192_s4, 4294959104  ;;  %v2066_v0 = vmov 0   ;;  %v1869_v1 = vld [vmem:[%s2556_s1] sm:$0xff]   ;;  %v1870_v2 = vld [vmem:[%s2556_s1 + $0x8] sm:$0xff]   ;;  %s1564_s25 = sshll.u32 %s2053_s15, 6  ;;  %vm1374_vm0 = vcmask 519168  }
  0x34   : > { %765 = vmatprep.subr.bf16.mxu0 %v2066_v0  ;;  %1779 = vmatprep.subr.bf16.mxu1 %v2066_v0  ;;  %v1871_v3 = vld [vmem:[%s2556_s1 + $0x10] sm:$0xff]   ;;  %v1872_v4 = vld [vmem:[%s2556_s1 + $0x18] sm:$0xff]   ;;  %v1873_v5 = vld [vmem:[%s2556_s1 + $0x20] sm:$0xff]   ;;  %p237_p7 = scmp.lt.s32.totalorder %s1564_s25, 255 }
  0x35   : > { %766 = vmatpush1.bf16.msra.mxu0 %v1869_v1  ;;  %1795 = vmatpush1.bf16.msra.mxu1 %v1869_v1  ;;  %v1887_v6 = vld [vmem:[%s2184_s8 + $0x4] ss:$8 sps:$4 sm:$0xff]   ;;  %v1875_v9 = vld [vmem:[%s2556_s1 + $0x30] sm:$0xff]   ;;  %v1876_v10 = vld [vmem:[%s2556_s1 + $0x38] sm:$0xff]  }
  0x36   : > { %767 = vmatprep.subr.bf16.mxu0 %v2066_v0  ;;  %1780 = vmatprep.subr.bf16.mxu1 %v2066_v0  ;;  %v1874_v7 = vld [vmem:[%s2556_s1 + $0x28] sm:$0xff]   ;;  %v1877_v11 = vld [vmem:[%s2556_s1 + $0x40] sm:$0xff]   ;;  %v1879_v13 = vld [vmem:[%s2556_s1 + $0x50] sm:$0xff]   ;;  %s2570_s25 = smov (!%p237_p7, %s1564_s25), 255 }
  0x37   : > { %v1890_v8 = vld [vmem:[%s2184_s8 + $0x104] ss:$8 sps:$4 sm:$0xff]   ;;  %797 = vmatprep.mubr.bf16.mxu0 %v1887_v6  ;;  %v1880_v14 = vld [vmem:[%s2556_s1 + $0x58] sm:$0xff]   ;;  %v1883_v17 = vld [vmem:[%s2556_s1 + $0x70] sm:$0xff]   ;;  %s1565_s28 = sshll.u32 %s2570_s25, 2 }
  0x38   : > { %925 = vmatprep.mubr.bf16.mxu1 %v1890_v8  ;;  %v1878_v12 = vld [vmem:[%s2556_s1 + $0x48] sm:$0xff]   ;;  %v1881_v15 = vld [vmem:[%s2556_s1 + $0x60] sm:$0xff]   ;;  %v1884_v18 = vld [vmem:[%s2556_s1 + $0x78] sm:$0xff]   ;;  %s2347_s29 = scalar_lea.vmem %s2558_s3, %s1565_s28 }
  0x39   : > { %768 = vmatpush1.bf16.msra.mxu0 %v1870_v2  ;;  %1796 = vmatpush1.bf16.msra.mxu1 %v1870_v2  ;;  %v1882_v16 = vld [vmem:[%s2556_s1 + $0x68] sm:$0xff]   ;;  %v1891_v21 = vld [vmem:[%s2184_s8 + $0x14] ss:$8 sps:$4 sm:$0xff]   ;;  %v1895_v23 = vld [vmem:[%s2184_s8 + $0x10] ss:$8 sps:$4 sm:$0xff]  }
  0x3a   : > { %769 = vmatprep.subr.bf16.mxu0 %v2066_v0  ;;  %1781 = vmatprep.subr.bf16.mxu1 %v2066_v0  ;;  %v1885_v19 = vld [vmem:[%s2184_s8] ss:$8 sps:$4 sm:$0xff]   ;;  %v1893_v22 = vld [vmem:[%s2184_s8 + $0x114] ss:$8 sps:$4 sm:$0xff]   ;;  %v1896_v24 = vld [vmem:[%s2184_s8 + $0x110] ss:$8 sps:$4 sm:$0xff]  }
  0x3b   : > { %v1888_v20 = vld [vmem:[%s2184_s8 + $0x100] ss:$8 sps:$4 sm:$0xff]   ;;  %v1897_v25 = vld [vmem:[%s2184_s8 + $0x24] ss:$8 sps:$4 sm:$0xff]   ;;  %v1903_v29 = vld [vmem:[%s2184_s8 + $0x34] ss:$8 sps:$4 sm:$0xff]  }
  0x3c   : > { %v1899_v26 = vld [vmem:[%s2184_s8 + $0x124] ss:$8 sps:$4 sm:$0xff]   ;;  %v1901_v27 = vld [vmem:[%s2184_s8 + $0x20] ss:$8 sps:$4 sm:$0xff]   ;;  %v1905_v30 = vld [vmem:[%s2184_s8 + $0x134] ss:$8 sps:$4 sm:$0xff]  }
  0x3d   : > { %770 = vmatpush1.bf16.msra.mxu0 %v1871_v3  ;;  %1797 = vmatpush1.bf16.msra.mxu1 %v1871_v3  ;;  %v1902_v28 = vld [vmem:[%s2184_s8 + $0x120] ss:$8 sps:$4 sm:$0xff]   ;;  %v1907_v31 = vld [vmem:[%s2184_s8 + $0x30] ss:$8 sps:$4 sm:$0xff]   ;;  %v1909_v33 = vld [vmem:[%s2184_s8 + $0x44] ss:$8 sps:$4 sm:$0xff]  }
  0x3e   : > { %771 = vmatprep.subr.bf16.mxu0 %v2066_v0  ;;  %1782 = vmatprep.subr.bf16.mxu1 %v2066_v0  ;;  %v1908_v32 = vld [vmem:[%s2184_s8 + $0x130] ss:$8 sps:$4 sm:$0xff]   ;;  %v1911_v34 = vld [vmem:[%s2184_s8 + $0x144] ss:$8 sps:$4 sm:$0xff]   ;;  %v1913_v35 = vld [vmem:[%s2184_s8 + $0x40] ss:$8 sps:$4 sm:$0xff]  }
  0x3f   : > { %v1914_v36 = vld [vmem:[%s2184_s8 + $0x140] ss:$8 sps:$4 sm:$0xff]   ;;  %v1915_v37 = vld [vmem:[%s2184_s8 + $0x54] ss:$8 sps:$4 sm:$0xff]   ;;  %v1919_v39 = vld [vmem:[%s2184_s8 + $0x50] ss:$8 sps:$4 sm:$0xff]  }
  0x40   : > { %v1917_v38 = vld [vmem:[%s2184_s8 + $0x154] ss:$8 sps:$4 sm:$0xff]   ;;  %v1920_v40 = vld [vmem:[%s2184_s8 + $0x150] ss:$8 sps:$4 sm:$0xff]   ;;  %v1921_v41 = vld [vmem:[%s2184_s8 + $0x64] ss:$8 sps:$4 sm:$0xff]  }
  0x41   : > { %772 = vmatpush1.bf16.msra.mxu0 %v1872_v4  ;;  %1798 = vmatpush1.bf16.msra.mxu1 %v1872_v4  ;;  %v1923_v42 = vld [vmem:[%s2184_s8 + $0x164] ss:$8 sps:$4 sm:$0xff]   ;;  %v1925_v43 = vld [vmem:[%s2184_s8 + $0x60] ss:$8 sps:$4 sm:$0xff]   ;;  %v1927_v45 = vld [vmem:[%s2184_s8 + $0x74] ss:$8 sps:$4 sm:$0xff]  }
  0x42   : > { %773 = vmatprep.subr.bf16.mxu0 %v2066_v0  ;;  %1783 = vmatprep.subr.bf16.mxu1 %v2066_v0  ;;  %v1926_v44 = vld [vmem:[%s2184_s8 + $0x160] ss:$8 sps:$4 sm:$0xff]   ;;  %v1929_v46 = vld [vmem:[%s2184_s8 + $0x174] ss:$8 sps:$4 sm:$0xff]   ;;  %v1931_v47 = vld [vmem:[%s2184_s8 + $0x70] ss:$8 sps:$4 sm:$0xff]  }
  0x43   : > { %v1932_v48 = vld [vmem:[%s2184_s8 + $0x170] ss:$8 sps:$4 sm:$0xff]   ;;  %v1933_v49 = vld [vmem:[%s2184_s8 + $0x84] ss:$8 sps:$4 sm:$0xff]   ;;  %v1937_v51 = vld [vmem:[%s2184_s8 + $0x80] ss:$8 sps:$4 sm:$0xff]  }
  0x44   : > { %v1935_v50 = vld [vmem:[%s2184_s8 + $0x184] ss:$8 sps:$4 sm:$0xff]   ;;  %v1938_v52 = vld [vmem:[%s2184_s8 + $0x180] ss:$8 sps:$4 sm:$0xff]   ;;  %v1939_v53 = vld [vmem:[%s2184_s8 + $0x94] ss:$8 sps:$4 sm:$0xff]  }
  0x45   : > { %774 = vmatpush1.bf16.msra.mxu0 %v1873_v5  ;;  %1799 = vmatpush1.bf16.msra.mxu1 %v1873_v5  ;;  %v1941_v54 = vld [vmem:[%s2184_s8 + $0x194] ss:$8 sps:$4 sm:$0xff]   ;;  %v1943_v55 = vld [vmem:[%s2184_s8 + $0x90] ss:$8 sps:$4 sm:$0xff]   ;;  %v1945_v57 = vld [vmem:[%s2184_s8 + $0xa4] ss:$8 sps:$4 sm:$0xff]  }
  0x46   : > { %775 = vmatprep.subr.bf16.mxu0 %v2066_v0  ;;  %1784 = vmatprep.subr.bf16.mxu1 %v2066_v0  ;;  %v1944_v56 = vld [vmem:[%s2184_s8 + $0x190] ss:$8 sps:$4 sm:$0xff]   ;;  %v1947_v58 = vld [vmem:[%s2184_s8 + $0x1a4] ss:$8 sps:$4 sm:$0xff]   ;;  %v1949_v59 = vld [vmem:[%s2184_s8 + $0xa0] ss:$8 sps:$4 sm:$0xff]  }
  0x47   : > { %v1950_v60 = vld [vmem:[%s2184_s8 + $0x1a0] ss:$8 sps:$4 sm:$0xff]   ;;  %v1951_v61 = vld [vmem:[%s2184_s8 + $0xb4] ss:$8 sps:$4 sm:$0xff]   ;;  %v1955_v63 = vld [vmem:[%s2184_s8 + $0xb0] ss:$8 sps:$4 sm:$0xff]  }
  0x48   : > { %v1953_v62 = vld [vmem:[%s2184_s8 + $0x1b4] ss:$8 sps:$4 sm:$0xff]   ;;  %v1957_v1 = vld [vmem:[%s2184_s8 + $0xc4] ss:$8 sps:$4 sm:$0xff]   ;;  %v1961_v3 = vld [vmem:[%s2184_s8 + $0xc0] ss:$8 sps:$4 sm:$0xff]  }
  0x49   : > { %776 = vmatpush1.bf16.msra.mxu0 %v1874_v7  ;;  %1800 = vmatpush1.bf16.msra.mxu1 %v1874_v7  ;;  %v1959_v2 = vld [vmem:[%s2184_s8 + $0x1c4] ss:$8 sps:$4 sm:$0xff]   ;;  %v1962_v4 = vld [vmem:[%s2184_s8 + $0x1c0] ss:$8 sps:$4 sm:$0xff]   ;;  %v1963_v5 = vld [vmem:[%s2184_s8 + $0xd4] ss:$8 sps:$4 sm:$0xff]  }
  0x4a   : > { %777 = vmatprep.subr.bf16.mxu0 %v2066_v0  ;;  %1785 = vmatprep.subr.bf16.mxu1 %v2066_v0  ;;  %v1965_v6 = vld [vmem:[%s2184_s8 + $0x1d4] ss:$8 sps:$4 sm:$0xff]   ;;  %v1967_v7 = vld [vmem:[%s2184_s8 + $0xd0] ss:$8 sps:$4 sm:$0xff]  }
  0x4b   : > { %v1968_v8 = vld [vmem:[%s2184_s8 + $0x1d0] ss:$8 sps:$4 sm:$0xff]  }
  0x4d   : > { %778 = vmatpush1.bf16.msra.mxu0 %v1875_v9  ;;  %1801 = vmatpush1.bf16.msra.mxu1 %v1875_v9  ;;  %v1969_v9 = vld [vmem:[%s2184_s8 + $0xe4] ss:$8 sps:$4 sm:$0xff]  }
  0x4e   : > { %779 = vmatprep.subr.bf16.mxu0 %v2066_v0  ;;  %1786 = vmatprep.subr.bf16.mxu1 %v2066_v0 }
  0x51   : > { %780 = vmatpush1.bf16.msra.mxu0 %v1876_v10  ;;  %1802 = vmatpush1.bf16.msra.mxu1 %v1876_v10  ;;  %v1971_v10 = vld [vmem:[%s2184_s8 + $0x1e4] ss:$8 sps:$4 sm:$0xff]  }
  0x52   : > { %781 = vmatprep.subr.bf16.mxu0 %v2066_v0  ;;  %1787 = vmatprep.subr.bf16.mxu1 %v2066_v0 }
  0x55   : > { %782 = vmatpush1.bf16.msra.mxu0 %v1877_v11  ;;  %1803 = vmatpush1.bf16.msra.mxu1 %v1877_v11  ;;  %v1973_v11 = vld [vmem:[%s2184_s8 + $0xe0] ss:$8 sps:$4 sm:$0xff]  }
  0x56   : > { %783 = vmatprep.subr.bf16.mxu0 %v2066_v0  ;;  %1788 = vmatprep.subr.bf16.mxu1 %v2066_v0 }
  0x59   : > { %784 = vmatpush1.bf16.msra.mxu0 %v1878_v12  ;;  %1804 = vmatpush1.bf16.msra.mxu1 %v1878_v12  ;;  %v1974_v12 = vld [vmem:[%s2184_s8 + $0x1e0] ss:$8 sps:$4 sm:$0xff]  }
  0x5a   : > { %785 = vmatprep.subr.bf16.mxu0 %v2066_v0  ;;  %1789 = vmatprep.subr.bf16.mxu1 %v2066_v0 }
  0x5d   : > { %786 = vmatpush1.bf16.msra.mxu0 %v1879_v13  ;;  %1805 = vmatpush1.bf16.msra.mxu1 %v1879_v13  ;;  %v1975_v13 = vld [vmem:[%s2184_s8 + $0xf4] ss:$8 sps:$4 sm:$0xff]  }
  0x5e   : > { %787 = vmatprep.subr.bf16.mxu0 %v2066_v0  ;;  %1790 = vmatprep.subr.bf16.mxu1 %v2066_v0 }
  0x61   : > { %788 = vmatpush1.bf16.msra.mxu0 %v1880_v14  ;;  %1806 = vmatpush1.bf16.msra.mxu1 %v1880_v14  ;;  %v1977_v14 = vld [vmem:[%s2184_s8 + $0x1f4] ss:$8 sps:$4 sm:$0xff]  }
  0x62   : > { %789 = vmatprep.subr.bf16.mxu0 %v2066_v0  ;;  %1791 = vmatprep.subr.bf16.mxu1 %v2066_v0 }
  0x65   : > { %790 = vmatpush1.bf16.msra.mxu0 %v1881_v15  ;;  %1807 = vmatpush1.bf16.msra.mxu1 %v1881_v15  ;;  %v1979_v15 = vld [vmem:[%s2184_s8 + $0xf0] ss:$8 sps:$4 sm:$0xff]  }
  0x66   : > { %791 = vmatprep.subr.bf16.mxu0 %v2066_v0  ;;  %1792 = vmatprep.subr.bf16.mxu1 %v2066_v0 }
  0x69   : > { %792 = vmatpush1.bf16.msra.mxu0 %v1882_v16  ;;  %1808 = vmatpush1.bf16.msra.mxu1 %v1882_v16  ;;  %v1980_v16 = vld [vmem:[%s2184_s8 + $0x1f0] ss:$8 sps:$4 sm:$0xff]  }
  0x6a   : > { %793 = vmatprep.subr.bf16.mxu0 %v2066_v0  ;;  %1793 = vmatprep.subr.bf16.mxu1 %v2066_v0 }
  0x6d   : > { %794 = vmatpush1.bf16.msra.mxu0 %v1883_v17  ;;  %1809 = vmatpush1.bf16.msra.mxu1 %v1883_v17  ;;  %v2338_v17 = vld [vmem:[%s2557_s2] ss:$0 sm:$0xff] }
  0x6e   : > { %795 = vmatprep.subr.bf16.mxu0 %v2066_v0  ;;  %1794 = vmatprep.subr.bf16.mxu1 %v2066_v0  ;;  %v1956_v0 = vld [vmem:[%s2184_s8 + $0x1b0] ss:$8 sps:$4 sm:$0xff]  }
  0x71   : > { %796 = vmatpush1.bf16.msra.mxu0 %v1884_v18  ;;  %1810 = vmatpush1.bf16.msra.mxu1 %v1884_v18 }
  0x74   : > { %798 = vmatmul.mubr.bf16.vlgmr.msra.gmra.mrb[0].mxu0 %v1885_v19  ;;  %926 = vmatmul.mubr.bf16.vlgmr.msra.gmra.mrb[0].mxu1 %v1888_v20 }
  0x75   : > { %805 = vmatprep.mubr.bf16.mxu0 %v1891_v21  ;;  %933 = vmatprep.mubr.bf16.mxu1 %v1893_v22 }
  0x7c   : > { %806 = vmatmul.mubr.bf16.gmra.mrb[4].mxu0 %v1895_v23  ;;  %934 = vmatmul.mubr.bf16.gmra.mrb[4].mxu1 %v1896_v24 }
  0x7d   : > { %813 = vmatprep.mubr.bf16.mxu0 %v1897_v25  ;;  %941 = vmatprep.mubr.bf16.mxu1 %v1899_v26 }
  0x84   : > { %814 = vmatmul.mubr.bf16.gmra.mrb[8].mxu0 %v1901_v27  ;;  %942 = vmatmul.mubr.bf16.gmra.mrb[8].mxu1 %v1902_v28 }
  0x85   : > { %821 = vmatprep.mubr.bf16.mxu0 %v1903_v29  ;;  %949 = vmatprep.mubr.bf16.mxu1 %v1905_v30 }
  0x8c   : > { %822 = vmatmul.mubr.bf16.gmra.mrb[12].mxu0 %v1907_v31  ;;  %950 = vmatmul.mubr.bf16.gmra.mrb[12].mxu1 %v1908_v32 }
  0x8d   : > { %829 = vmatprep.mubr.bf16.mxu0 %v1909_v33  ;;  %957 = vmatprep.mubr.bf16.mxu1 %v1911_v34 }
  0x94   : > { %830 = vmatmul.mubr.bf16.gmra.mrb[16].mxu0 %v1913_v35  ;;  %958 = vmatmul.mubr.bf16.gmra.mrb[16].mxu1 %v1914_v36 }
  0x95   : > { %837 = vmatprep.mubr.bf16.mxu0 %v1915_v37  ;;  %965 = vmatprep.mubr.bf16.mxu1 %v1917_v38 }
  0x9c   : > { %838 = vmatmul.mubr.bf16.gmra.mrb[20].mxu0 %v1919_v39  ;;  %966 = vmatmul.mubr.bf16.gmra.mrb[20].mxu1 %v1920_v40 }
  0x9d   : > { %845 = vmatprep.mubr.bf16.mxu0 %v1921_v41  ;;  %973 = vmatprep.mubr.bf16.mxu1 %v1923_v42 }
  0xa4   : > { %846 = vmatmul.mubr.bf16.gmra.mrb[24].mxu0 %v1925_v43  ;;  %974 = vmatmul.mubr.bf16.gmra.mrb[24].mxu1 %v1926_v44 }
  0xa5   : > { %853 = vmatprep.mubr.bf16.mxu0 %v1927_v45  ;;  %981 = vmatprep.mubr.bf16.mxu1 %v1929_v46 }
  0xac   : > { %854 = vmatmul.mubr.bf16.gmra.mrb[28].mxu0 %v1931_v47  ;;  %982 = vmatmul.mubr.bf16.gmra.mrb[28].mxu1 %v1932_v48 }
  0xad   : > { %861 = vmatprep.mubr.bf16.mxu0 %v1933_v49  ;;  %989 = vmatprep.mubr.bf16.mxu1 %v1935_v50 }
  0xb4   : > { %862 = vmatmul.mubr.bf16.gmra.mrb[32].mxu0 %v1937_v51  ;;  %990 = vmatmul.mubr.bf16.gmra.mrb[32].mxu1 %v1938_v52 }
  0xb5   : > { %869 = vmatprep.mubr.bf16.mxu0 %v1939_v53  ;;  %997 = vmatprep.mubr.bf16.mxu1 %v1941_v54 }
  0xbc   : > { %870 = vmatmul.mubr.bf16.gmra.mrb[36].mxu0 %v1943_v55  ;;  %998 = vmatmul.mubr.bf16.gmra.mrb[36].mxu1 %v1944_v56 }
  0xbd   : > { %877 = vmatprep.mubr.bf16.mxu0 %v1945_v57  ;;  %1005 = vmatprep.mubr.bf16.mxu1 %v1947_v58 }
  0xc4   : > { %878 = vmatmul.mubr.bf16.gmra.mrb[40].mxu0 %v1949_v59  ;;  %1006 = vmatmul.mubr.bf16.gmra.mrb[40].mxu1 %v1950_v60 }
  0xc5   : > { %885 = vmatprep.mubr.bf16.mxu0 %v1951_v61  ;;  %1013 = vmatprep.mubr.bf16.mxu1 %v1953_v62 }
  0xcc   : > { %886 = vmatmul.mubr.bf16.gmra.mrb[44].mxu0 %v1955_v63  ;;  %1014 = vmatmul.mubr.bf16.gmra.mrb[44].mxu1 %v1956_v0 }
  0xcd   : > { %893 = vmatprep.mubr.bf16.mxu0 %v1957_v1  ;;  %1021 = vmatprep.mubr.bf16.mxu1 %v1959_v2 }
  0xd4   : > { %894 = vmatmul.mubr.bf16.gmra.mrb[48].mxu0 %v1961_v3  ;;  %1022 = vmatmul.mubr.bf16.gmra.mrb[48].mxu1 %v1962_v4 }
  0xd5   : > { %901 = vmatprep.mubr.bf16.mxu0 %v1963_v5  ;;  %1029 = vmatprep.mubr.bf16.mxu1 %v1965_v6 }
  0xdc   : > { %902 = vmatmul.mubr.bf16.gmra.mrb[52].mxu0 %v1967_v7  ;;  %1030 = vmatmul.mubr.bf16.gmra.mrb[52].mxu1 %v1968_v8 }
  0xdd   : > { %909 = vmatprep.mubr.bf16.mxu0 %v1969_v9  ;;  %1037 = vmatprep.mubr.bf16.mxu1 %v1971_v10 }
  0xe4   : > { %910 = vmatmul.mubr.bf16.gmra.mrb[56].mxu0 %v1973_v11  ;;  %1038 = vmatmul.mubr.bf16.gmra.mrb[56].mxu1 %v1974_v12 }
  0xe5   : > { %917 = vmatprep.mubr.bf16.mxu0 %v1975_v13  ;;  %1045 = vmatprep.mubr.bf16.mxu1 %v1977_v14 }
  0xec   : > { %918 = vmatmul.mubr.bf16.gmra.mrb[60].mxu0 %v1979_v15  ;;  %1046 = vmatmul.mubr.bf16.gmra.mrb[60].mxu1 %v1980_v16 }
 0x147   : > { %v799_v18 = vpop.f32.mrb[0].mxu0  ;;  %v927_v19 = vpop.f32.mrb[0].mxu1 }
 0x148   : > { %v800_v20 = vadd.f32 %v2338_v17, %v799_v18  ;;  %v928_v21 = vadd.f32 %v2338_v17, %v927_v19  ;;  %v801_v22 = vpop.f32.mrb[1].mxu0  ;;  %v929_v23 = vpop.f32.mrb[1].mxu1 }
 0x149   : > { %v802_v24 = vpop.f32.mrb[2].mxu0  ;;  %v930_v25 = vpop.f32.mrb[2].mxu1 }
 0x14a   : > { %v1054_v26 = vmax.f32 %v800_v20, 0.0  ;;  %v1086_v27 = vmax.f32 %v928_v21, 0.0  ;;  %v803_v28 = vadd.f32 %v2338_v17, %v802_v24  ;;  %v931_v29 = vadd.f32 %v2338_v17, %v930_v25  ;;  %v804_v30 = vpop.f32.mrb[3].mxu0  ;;  %v932_v31 = vpop.f32.mrb[3].mxu1 }
 0x14c   : > { %v1715_v32 = vpack.c.bf16 %v1054_v26, %v1054_v26  ;;  %v1747_v33 = vpack.c.bf16 %v1086_v27, %v1086_v27  ;;  %v1055_v34 = vmax.f32 %v803_v28, 0.0  ;;  %v1087_v35 = vmax.f32 %v931_v29, 0.0 }
 0x14e   : > { %1375 = vst.msk [vmem:[%s2347_s29] sm:$0xf] %vm1374_vm0, %v1715_v32  ;;  %1407 = vst.msk [vmem:[%s2347_s29 + $0x80] sm:$0xf] %vm1374_vm0, %v1747_v33  ;;  %v1716_v36 = vpack.c.bf16 %v1055_v34, %v1055_v34  ;;  %v1748_v37 = vpack.c.bf16 %v1087_v35, %v1087_v35 }
 0x14f   : > { %v807_v38 = vpop.f32.mrb[4].mxu0  ;;  %v935_v39 = vpop.f32.mrb[4].mxu1 }
 0x150   : > { %1376 = vst.msk [vmem:[%s2347_s29 + $0x4] sm:$0xf] %vm1374_vm0, %v1716_v36  ;;  %1408 = vst.msk [vmem:[%s2347_s29 + $0x84] sm:$0xf] %vm1374_vm0, %v1748_v37  ;;  %v808_v40 = vadd.f32 %v2338_v17, %v807_v38  ;;  %v936_v41 = vadd.f32 %v2338_v17, %v935_v39  ;;  %v809_v42 = vpop.f32.mrb[5].mxu0  ;;  %v937_v43 = vpop.f32.mrb[5].mxu1 }
 0x151   : > { %v810_v44 = vpop.f32.mrb[6].mxu0  ;;  %v938_v45 = vpop.f32.mrb[6].mxu1 }
 0x152   : > { %v1056_v46 = vmax.f32 %v808_v40, 0.0  ;;  %v1088_v47 = vmax.f32 %v936_v41, 0.0  ;;  %v811_v48 = vadd.f32 %v2338_v17, %v810_v44  ;;  %v939_v49 = vadd.f32 %v2338_v17, %v938_v45  ;;  %v812_v50 = vpop.f32.mrb[7].mxu0  ;;  %v940_v51 = vpop.f32.mrb[7].mxu1 }
 0x154   : > { %v1717_v52 = vpack.c.bf16 %v1056_v46, %v1056_v46  ;;  %v1749_v53 = vpack.c.bf16 %v1088_v47, %v1088_v47  ;;  %v1057_v54 = vmax.f32 %v811_v48, 0.0  ;;  %v1089_v55 = vmax.f32 %v939_v49, 0.0 }
 0x156   : > { %1377 = vst.msk [vmem:[%s2347_s29 + $0x8] sm:$0xf] %vm1374_vm0, %v1717_v52  ;;  %1409 = vst.msk [vmem:[%s2347_s29 + $0x88] sm:$0xf] %vm1374_vm0, %v1749_v53  ;;  %v1718_v56 = vpack.c.bf16 %v1057_v54, %v1057_v54  ;;  %v1750_v57 = vpack.c.bf16 %v1089_v55, %v1089_v55 }
 0x157   : > { %v815_v58 = vpop.f32.mrb[8].mxu0  ;;  %v943_v59 = vpop.f32.mrb[8].mxu1 }
 0x158   : > { %1378 = vst.msk [vmem:[%s2347_s29 + $0xc] sm:$0xf] %vm1374_vm0, %v1718_v56  ;;  %1410 = vst.msk [vmem:[%s2347_s29 + $0x8c] sm:$0xf] %vm1374_vm0, %v1750_v57  ;;  %v816_v60 = vadd.f32 %v2338_v17, %v815_v58  ;;  %v944_v61 = vadd.f32 %v2338_v17, %v943_v59  ;;  %v817_v62 = vpop.f32.mrb[9].mxu0  ;;  %v945_v63 = vpop.f32.mrb[9].mxu1 }
 0x159   : > { %v818_v0 = vpop.f32.mrb[10].mxu0  ;;  %v946_v1 = vpop.f32.mrb[10].mxu1 }
 0x15a   : > { %v1058_v2 = vmax.f32 %v816_v60, 0.0  ;;  %v1090_v3 = vmax.f32 %v944_v61, 0.0  ;;  %v819_v4 = vadd.f32 %v2338_v17, %v818_v0  ;;  %v947_v5 = vadd.f32 %v2338_v17, %v946_v1  ;;  %v820_v6 = vpop.f32.mrb[11].mxu0  ;;  %v948_v7 = vpop.f32.mrb[11].mxu1 }
 0x15c   : > { %v1719_v8 = vpack.c.bf16 %v1058_v2, %v1058_v2  ;;  %v1751_v9 = vpack.c.bf16 %v1090_v3, %v1090_v3  ;;  %v1059_v10 = vmax.f32 %v819_v4, 0.0  ;;  %v1091_v11 = vmax.f32 %v947_v5, 0.0 }
 0x15e   : > { %1379 = vst.msk [vmem:[%s2347_s29 + $0x10] sm:$0xf] %vm1374_vm0, %v1719_v8  ;;  %1411 = vst.msk [vmem:[%s2347_s29 + $0x90] sm:$0xf] %vm1374_vm0, %v1751_v9  ;;  %v1720_v12 = vpack.c.bf16 %v1059_v10, %v1059_v10  ;;  %v1752_v13 = vpack.c.bf16 %v1091_v11, %v1091_v11 }
 0x15f   : > { %v823_v14 = vpop.f32.mrb[12].mxu0  ;;  %v951_v15 = vpop.f32.mrb[12].mxu1 }
 0x160   : > { %1380 = vst.msk [vmem:[%s2347_s29 + $0x14] sm:$0xf] %vm1374_vm0, %v1720_v12  ;;  %1412 = vst.msk [vmem:[%s2347_s29 + $0x94] sm:$0xf] %vm1374_vm0, %v1752_v13  ;;  %v824_v16 = vadd.f32 %v2338_v17, %v823_v14  ;;  %v952_v18 = vadd.f32 %v2338_v17, %v951_v15  ;;  %v825_v19 = vpop.f32.mrb[13].mxu0  ;;  %v953_v20 = vpop.f32.mrb[13].mxu1 }
 0x161   : > { %v826_v21 = vpop.f32.mrb[14].mxu0  ;;  %v954_v22 = vpop.f32.mrb[14].mxu1 }
 0x162   : > { %v1060_v23 = vmax.f32 %v824_v16, 0.0  ;;  %v1092_v24 = vmax.f32 %v952_v18, 0.0  ;;  %v827_v25 = vadd.f32 %v2338_v17, %v826_v21  ;;  %v955_v26 = vadd.f32 %v2338_v17, %v954_v22  ;;  %v828_v27 = vpop.f32.mrb[15].mxu0  ;;  %v956_v28 = vpop.f32.mrb[15].mxu1 }
 0x164   : > { %v1721_v29 = vpack.c.bf16 %v1060_v23, %v1060_v23  ;;  %v1753_v30 = vpack.c.bf16 %v1092_v24, %v1092_v24  ;;  %v1061_v31 = vmax.f32 %v827_v25, 0.0  ;;  %v1093_v32 = vmax.f32 %v955_v26, 0.0 }
 0x166   : > { %1381 = vst.msk [vmem:[%s2347_s29 + $0x18] sm:$0xf] %vm1374_vm0, %v1721_v29  ;;  %1413 = vst.msk [vmem:[%s2347_s29 + $0x98] sm:$0xf] %vm1374_vm0, %v1753_v30  ;;  %v1722_v33 = vpack.c.bf16 %v1061_v31, %v1061_v31  ;;  %v1754_v34 = vpack.c.bf16 %v1093_v32, %v1093_v32 }
 0x167   : > { %v831_v35 = vpop.f32.mrb[16].mxu0  ;;  %v959_v36 = vpop.f32.mrb[16].mxu1 }
 0x168   : > { %1382 = vst.msk [vmem:[%s2347_s29 + $0x1c] sm:$0xf] %vm1374_vm0, %v1722_v33  ;;  %1414 = vst.msk [vmem:[%s2347_s29 + $0x9c] sm:$0xf] %vm1374_vm0, %v1754_v34  ;;  %v832_v37 = vadd.f32 %v2338_v17, %v831_v35  ;;  %v960_v38 = vadd.f32 %v2338_v17, %v959_v36  ;;  %v833_v39 = vpop.f32.mrb[17].mxu0  ;;  %v961_v40 = vpop.f32.mrb[17].mxu1 }
 0x169   : > { %v834_v41 = vpop.f32.mrb[18].mxu0  ;;  %v962_v42 = vpop.f32.mrb[18].mxu1 }
 0x16a   : > { %v1062_v43 = vmax.f32 %v832_v37, 0.0  ;;  %v1094_v44 = vmax.f32 %v960_v38, 0.0  ;;  %v835_v45 = vadd.f32 %v2338_v17, %v834_v41  ;;  %v963_v46 = vadd.f32 %v2338_v17, %v962_v42  ;;  %v836_v47 = vpop.f32.mrb[19].mxu0  ;;  %v964_v48 = vpop.f32.mrb[19].mxu1 }
 0x16c   : > { %v1723_v49 = vpack.c.bf16 %v1062_v43, %v1062_v43  ;;  %v1755_v50 = vpack.c.bf16 %v1094_v44, %v1094_v44  ;;  %v1063_v51 = vmax.f32 %v835_v45, 0.0  ;;  %v1095_v52 = vmax.f32 %v963_v46, 0.0 }
 0x16e   : > { %1383 = vst.msk [vmem:[%s2347_s29 + $0x20] sm:$0xf] %vm1374_vm0, %v1723_v49  ;;  %1415 = vst.msk [vmem:[%s2347_s29 + $0xa0] sm:$0xf] %vm1374_vm0, %v1755_v50  ;;  %v1724_v53 = vpack.c.bf16 %v1063_v51, %v1063_v51  ;;  %v1756_v54 = vpack.c.bf16 %v1095_v52, %v1095_v52 }
 0x16f   : > { %v839_v55 = vpop.f32.mrb[20].mxu0  ;;  %v967_v56 = vpop.f32.mrb[20].mxu1 }
 0x170   : > { %1384 = vst.msk [vmem:[%s2347_s29 + $0x24] sm:$0xf] %vm1374_vm0, %v1724_v53  ;;  %1416 = vst.msk [vmem:[%s2347_s29 + $0xa4] sm:$0xf] %vm1374_vm0, %v1756_v54  ;;  %v840_v57 = vadd.f32 %v2338_v17, %v839_v55  ;;  %v968_v58 = vadd.f32 %v2338_v17, %v967_v56  ;;  %v841_v59 = vpop.f32.mrb[21].mxu0  ;;  %v969_v60 = vpop.f32.mrb[21].mxu1 }
 0x171   : > { %v842_v61 = vpop.f32.mrb[22].mxu0  ;;  %v970_v62 = vpop.f32.mrb[22].mxu1 }
 0x172   : > { %v1064_v63 = vmax.f32 %v840_v57, 0.0  ;;  %v1096_v0 = vmax.f32 %v968_v58, 0.0  ;;  %v843_v1 = vadd.f32 %v2338_v17, %v842_v61  ;;  %v971_v2 = vadd.f32 %v2338_v17, %v970_v62  ;;  %v844_v3 = vpop.f32.mrb[23].mxu0  ;;  %v972_v4 = vpop.f32.mrb[23].mxu1 }
 0x174   : > { %v1725_v5 = vpack.c.bf16 %v1064_v63, %v1064_v63  ;;  %v1757_v6 = vpack.c.bf16 %v1096_v0, %v1096_v0  ;;  %v1065_v7 = vmax.f32 %v843_v1, 0.0  ;;  %v1097_v8 = vmax.f32 %v971_v2, 0.0 }
 0x176   : > { %1385 = vst.msk [vmem:[%s2347_s29 + $0x28] sm:$0xf] %vm1374_vm0, %v1725_v5  ;;  %1417 = vst.msk [vmem:[%s2347_s29 + $0xa8] sm:$0xf] %vm1374_vm0, %v1757_v6  ;;  %v1726_v9 = vpack.c.bf16 %v1065_v7, %v1065_v7  ;;  %v1758_v10 = vpack.c.bf16 %v1097_v8, %v1097_v8 }
 0x177   : > { %v847_v11 = vpop.f32.mrb[24].mxu0  ;;  %v975_v12 = vpop.f32.mrb[24].mxu1 }
 0x178   : > { %1386 = vst.msk [vmem:[%s2347_s29 + $0x2c] sm:$0xf] %vm1374_vm0, %v1726_v9  ;;  %1418 = vst.msk [vmem:[%s2347_s29 + $0xac] sm:$0xf] %vm1374_vm0, %v1758_v10  ;;  %v848_v13 = vadd.f32 %v2338_v17, %v847_v11  ;;  %v976_v14 = vadd.f32 %v2338_v17, %v975_v12  ;;  %v849_v15 = vpop.f32.mrb[25].mxu0  ;;  %v977_v16 = vpop.f32.mrb[25].mxu1 }
 0x179   : > { %v850_v18 = vpop.f32.mrb[26].mxu0  ;;  %v978_v19 = vpop.f32.mrb[26].mxu1 }
 0x17a   : > { %v1066_v20 = vmax.f32 %v848_v13, 0.0  ;;  %v1098_v21 = vmax.f32 %v976_v14, 0.0  ;;  %v851_v22 = vadd.f32 %v2338_v17, %v850_v18  ;;  %v979_v23 = vadd.f32 %v2338_v17, %v978_v19  ;;  %v852_v24 = vpop.f32.mrb[27].mxu0  ;;  %v980_v25 = vpop.f32.mrb[27].mxu1 }
 0x17c   : > { %v1727_v26 = vpack.c.bf16 %v1066_v20, %v1066_v20  ;;  %v1759_v27 = vpack.c.bf16 %v1098_v21, %v1098_v21  ;;  %v1067_v28 = vmax.f32 %v851_v22, 0.0  ;;  %v1099_v29 = vmax.f32 %v979_v23, 0.0 }
 0x17e   : > { %1387 = vst.msk [vmem:[%s2347_s29 + $0x30] sm:$0xf] %vm1374_vm0, %v1727_v26  ;;  %1419 = vst.msk [vmem:[%s2347_s29 + $0xb0] sm:$0xf] %vm1374_vm0, %v1759_v27  ;;  %v1728_v30 = vpack.c.bf16 %v1067_v28, %v1067_v28  ;;  %v1760_v31 = vpack.c.bf16 %v1099_v29, %v1099_v29 }
 0x17f   : > { %v855_v32 = vpop.f32.mrb[28].mxu0  ;;  %v983_v33 = vpop.f32.mrb[28].mxu1 }
 0x180   : > { %1388 = vst.msk [vmem:[%s2347_s29 + $0x34] sm:$0xf] %vm1374_vm0, %v1728_v30  ;;  %1420 = vst.msk [vmem:[%s2347_s29 + $0xb4] sm:$0xf] %vm1374_vm0, %v1760_v31  ;;  %v856_v34 = vadd.f32 %v2338_v17, %v855_v32  ;;  %v984_v35 = vadd.f32 %v2338_v17, %v983_v33  ;;  %v857_v36 = vpop.f32.mrb[29].mxu0  ;;  %v985_v37 = vpop.f32.mrb[29].mxu1 }
 0x181   : > { %v858_v38 = vpop.f32.mrb[30].mxu0  ;;  %v986_v39 = vpop.f32.mrb[30].mxu1 }
 0x182   : > { %v1068_v40 = vmax.f32 %v856_v34, 0.0  ;;  %v1100_v41 = vmax.f32 %v984_v35, 0.0  ;;  %v859_v42 = vadd.f32 %v2338_v17, %v858_v38  ;;  %v987_v43 = vadd.f32 %v2338_v17, %v986_v39  ;;  %v860_v44 = vpop.f32.mrb[31].mxu0  ;;  %v988_v45 = vpop.f32.mrb[31].mxu1 }
 0x184   : > { %v1729_v46 = vpack.c.bf16 %v1068_v40, %v1068_v40  ;;  %v1761_v47 = vpack.c.bf16 %v1100_v41, %v1100_v41  ;;  %v1069_v48 = vmax.f32 %v859_v42, 0.0  ;;  %v1101_v49 = vmax.f32 %v987_v43, 0.0 }
 0x186   : > { %1389 = vst.msk [vmem:[%s2347_s29 + $0x38] sm:$0xf] %vm1374_vm0, %v1729_v46  ;;  %1421 = vst.msk [vmem:[%s2347_s29 + $0xb8] sm:$0xf] %vm1374_vm0, %v1761_v47  ;;  %v1730_v50 = vpack.c.bf16 %v1069_v48, %v1069_v48  ;;  %v1762_v51 = vpack.c.bf16 %v1101_v49, %v1101_v49 }
 0x187   : > { %v863_v52 = vpop.f32.mrb[32].mxu0  ;;  %v991_v53 = vpop.f32.mrb[32].mxu1 }
 0x188   : > { %1390 = vst.msk [vmem:[%s2347_s29 + $0x3c] sm:$0xf] %vm1374_vm0, %v1730_v50  ;;  %1422 = vst.msk [vmem:[%s2347_s29 + $0xbc] sm:$0xf] %vm1374_vm0, %v1762_v51  ;;  %v864_v54 = vadd.f32 %v2338_v17, %v863_v52  ;;  %v992_v55 = vadd.f32 %v2338_v17, %v991_v53  ;;  %v865_v56 = vpop.f32.mrb[33].mxu0  ;;  %v993_v57 = vpop.f32.mrb[33].mxu1 }
 0x189   : > { %v866_v58 = vpop.f32.mrb[34].mxu0  ;;  %v994_v59 = vpop.f32.mrb[34].mxu1 }
 0x18a   : > { %v1070_v60 = vmax.f32 %v864_v54, 0.0  ;;  %v1102_v61 = vmax.f32 %v992_v55, 0.0  ;;  %v867_v62 = vadd.f32 %v2338_v17, %v866_v58  ;;  %v995_v63 = vadd.f32 %v2338_v17, %v994_v59  ;;  %v868_v0 = vpop.f32.mrb[35].mxu0  ;;  %v996_v1 = vpop.f32.mrb[35].mxu1 }
 0x18c   : > { %v1731_v2 = vpack.c.bf16 %v1070_v60, %v1070_v60  ;;  %v1763_v3 = vpack.c.bf16 %v1102_v61, %v1102_v61  ;;  %v1071_v4 = vmax.f32 %v867_v62, 0.0  ;;  %v1103_v5 = vmax.f32 %v995_v63, 0.0 }
 0x18e   : > { %1391 = vst.msk [vmem:[%s2347_s29 + $0x40] sm:$0xf] %vm1374_vm0, %v1731_v2  ;;  %1423 = vst.msk [vmem:[%s2347_s29 + $0xc0] sm:$0xf] %vm1374_vm0, %v1763_v3  ;;  %v1732_v6 = vpack.c.bf16 %v1071_v4, %v1071_v4  ;;  %v1764_v7 = vpack.c.bf16 %v1103_v5, %v1103_v5 }
 0x18f   : > { %v871_v8 = vpop.f32.mrb[36].mxu0  ;;  %v999_v9 = vpop.f32.mrb[36].mxu1 }
 0x190   : > { %1392 = vst.msk [vmem:[%s2347_s29 + $0x44] sm:$0xf] %vm1374_vm0, %v1732_v6  ;;  %1424 = vst.msk [vmem:[%s2347_s29 + $0xc4] sm:$0xf] %vm1374_vm0, %v1764_v7  ;;  %v872_v10 = vadd.f32 %v2338_v17, %v871_v8  ;;  %v1000_v11 = vadd.f32 %v2338_v17, %v999_v9  ;;  %v873_v12 = vpop.f32.mrb[37].mxu0  ;;  %v1001_v13 = vpop.f32.mrb[37].mxu1 }
 0x191   : > { %v874_v14 = vpop.f32.mrb[38].mxu0  ;;  %v1002_v15 = vpop.f32.mrb[38].mxu1 }
 0x192   : > { %v1072_v16 = vmax.f32 %v872_v10, 0.0  ;;  %v1104_v18 = vmax.f32 %v1000_v11, 0.0  ;;  %v875_v19 = vadd.f32 %v2338_v17, %v874_v14  ;;  %v1003_v20 = vadd.f32 %v2338_v17, %v1002_v15  ;;  %v876_v21 = vpop.f32.mrb[39].mxu0  ;;  %v1004_v22 = vpop.f32.mrb[39].mxu1 }
 0x194   : > { %v1733_v23 = vpack.c.bf16 %v1072_v16, %v1072_v16  ;;  %v1765_v24 = vpack.c.bf16 %v1104_v18, %v1104_v18  ;;  %v1073_v25 = vmax.f32 %v875_v19, 0.0  ;;  %v1105_v26 = vmax.f32 %v1003_v20, 0.0 }
 0x196   : > { %1393 = vst.msk [vmem:[%s2347_s29 + $0x48] sm:$0xf] %vm1374_vm0, %v1733_v23  ;;  %1425 = vst.msk [vmem:[%s2347_s29 + $0xc8] sm:$0xf] %vm1374_vm0, %v1765_v24  ;;  %v1734_v27 = vpack.c.bf16 %v1073_v25, %v1073_v25  ;;  %v1766_v28 = vpack.c.bf16 %v1105_v26, %v1105_v26 }
 0x197   : > { %v879_v29 = vpop.f32.mrb[40].mxu0  ;;  %v1007_v30 = vpop.f32.mrb[40].mxu1 }
 0x198   : > { %1394 = vst.msk [vmem:[%s2347_s29 + $0x4c] sm:$0xf] %vm1374_vm0, %v1734_v27  ;;  %1426 = vst.msk [vmem:[%s2347_s29 + $0xcc] sm:$0xf] %vm1374_vm0, %v1766_v28  ;;  %v880_v31 = vadd.f32 %v2338_v17, %v879_v29  ;;  %v1008_v32 = vadd.f32 %v2338_v17, %v1007_v30  ;;  %v881_v33 = vpop.f32.mrb[41].mxu0  ;;  %v1009_v34 = vpop.f32.mrb[41].mxu1 }
 0x199   : > { %v882_v35 = vpop.f32.mrb[42].mxu0  ;;  %v1010_v36 = vpop.f32.mrb[42].mxu1 }
 0x19a   : > { %v1074_v37 = vmax.f32 %v880_v31, 0.0  ;;  %v1106_v38 = vmax.f32 %v1008_v32, 0.0  ;;  %v883_v39 = vadd.f32 %v2338_v17, %v882_v35  ;;  %v1011_v40 = vadd.f32 %v2338_v17, %v1010_v36  ;;  %v884_v41 = vpop.f32.mrb[43].mxu0  ;;  %v1012_v42 = vpop.f32.mrb[43].mxu1 }
 0x19c   : > { %v1735_v43 = vpack.c.bf16 %v1074_v37, %v1074_v37  ;;  %v1767_v44 = vpack.c.bf16 %v1106_v38, %v1106_v38  ;;  %v1075_v45 = vmax.f32 %v883_v39, 0.0  ;;  %v1107_v46 = vmax.f32 %v1011_v40, 0.0 }
 0x19e   : > { %1395 = vst.msk [vmem:[%s2347_s29 + $0x50] sm:$0xf] %vm1374_vm0, %v1735_v43  ;;  %1427 = vst.msk [vmem:[%s2347_s29 + $0xd0] sm:$0xf] %vm1374_vm0, %v1767_v44  ;;  %v1736_v47 = vpack.c.bf16 %v1075_v45, %v1075_v45  ;;  %v1768_v48 = vpack.c.bf16 %v1107_v46, %v1107_v46 }
 0x19f   : > { %v887_v49 = vpop.f32.mrb[44].mxu0  ;;  %v1015_v50 = vpop.f32.mrb[44].mxu1 }
 0x1a0   : > { %1396 = vst.msk [vmem:[%s2347_s29 + $0x54] sm:$0xf] %vm1374_vm0, %v1736_v47  ;;  %1428 = vst.msk [vmem:[%s2347_s29 + $0xd4] sm:$0xf] %vm1374_vm0, %v1768_v48  ;;  %v888_v51 = vadd.f32 %v2338_v17, %v887_v49  ;;  %v1016_v52 = vadd.f32 %v2338_v17, %v1015_v50  ;;  %v889_v53 = vpop.f32.mrb[45].mxu0  ;;  %v1017_v54 = vpop.f32.mrb[45].mxu1 }
 0x1a1   : > { %v890_v55 = vpop.f32.mrb[46].mxu0  ;;  %v1018_v56 = vpop.f32.mrb[46].mxu1 }
 0x1a2   : > { %v1076_v57 = vmax.f32 %v888_v51, 0.0  ;;  %v1108_v58 = vmax.f32 %v1016_v52, 0.0  ;;  %v891_v59 = vadd.f32 %v2338_v17, %v890_v55  ;;  %v1019_v60 = vadd.f32 %v2338_v17, %v1018_v56  ;;  %v892_v61 = vpop.f32.mrb[47].mxu0  ;;  %v1020_v62 = vpop.f32.mrb[47].mxu1 }
 0x1a4   : > { %v1737_v63 = vpack.c.bf16 %v1076_v57, %v1076_v57  ;;  %v1769_v0 = vpack.c.bf16 %v1108_v58, %v1108_v58  ;;  %v1077_v1 = vmax.f32 %v891_v59, 0.0  ;;  %v1109_v2 = vmax.f32 %v1019_v60, 0.0 }
 0x1a6   : > { %1397 = vst.msk [vmem:[%s2347_s29 + $0x58] sm:$0xf] %vm1374_vm0, %v1737_v63  ;;  %1429 = vst.msk [vmem:[%s2347_s29 + $0xd8] sm:$0xf] %vm1374_vm0, %v1769_v0  ;;  %v1738_v3 = vpack.c.bf16 %v1077_v1, %v1077_v1  ;;  %v1770_v4 = vpack.c.bf16 %v1109_v2, %v1109_v2 }
 0x1a7   : > { %v895_v5 = vpop.f32.mrb[48].mxu0  ;;  %v1023_v6 = vpop.f32.mrb[48].mxu1 }
 0x1a8   : > { %1398 = vst.msk [vmem:[%s2347_s29 + $0x5c] sm:$0xf] %vm1374_vm0, %v1738_v3  ;;  %1430 = vst.msk [vmem:[%s2347_s29 + $0xdc] sm:$0xf] %vm1374_vm0, %v1770_v4  ;;  %v896_v7 = vadd.f32 %v2338_v17, %v895_v5  ;;  %v1024_v8 = vadd.f32 %v2338_v17, %v1023_v6  ;;  %v897_v9 = vpop.f32.mrb[49].mxu0  ;;  %v1025_v10 = vpop.f32.mrb[49].mxu1 }
 0x1a9   : > { %v898_v11 = vpop.f32.mrb[50].mxu0  ;;  %v1026_v12 = vpop.f32.mrb[50].mxu1 }
 0x1aa   : > { %v1078_v13 = vmax.f32 %v896_v7, 0.0  ;;  %v1110_v14 = vmax.f32 %v1024_v8, 0.0  ;;  %v899_v15 = vadd.f32 %v2338_v17, %v898_v11  ;;  %v1027_v16 = vadd.f32 %v2338_v17, %v1026_v12  ;;  %v900_v18 = vpop.f32.mrb[51].mxu0  ;;  %v1028_v19 = vpop.f32.mrb[51].mxu1 }
 0x1ac   : > { %v1739_v20 = vpack.c.bf16 %v1078_v13, %v1078_v13  ;;  %v1771_v21 = vpack.c.bf16 %v1110_v14, %v1110_v14  ;;  %v1079_v22 = vmax.f32 %v899_v15, 0.0  ;;  %v1111_v23 = vmax.f32 %v1027_v16, 0.0 }
 0x1ae   : > { %1399 = vst.msk [vmem:[%s2347_s29 + $0x60] sm:$0xf] %vm1374_vm0, %v1739_v20  ;;  %1431 = vst.msk [vmem:[%s2347_s29 + $0xe0] sm:$0xf] %vm1374_vm0, %v1771_v21  ;;  %v1740_v24 = vpack.c.bf16 %v1079_v22, %v1079_v22  ;;  %v1772_v25 = vpack.c.bf16 %v1111_v23, %v1111_v23 }
 0x1af   : > { %v903_v26 = vpop.f32.mrb[52].mxu0  ;;  %v1031_v27 = vpop.f32.mrb[52].mxu1 }
 0x1b0   : > { %1400 = vst.msk [vmem:[%s2347_s29 + $0x64] sm:$0xf] %vm1374_vm0, %v1740_v24  ;;  %1432 = vst.msk [vmem:[%s2347_s29 + $0xe4] sm:$0xf] %vm1374_vm0, %v1772_v25  ;;  %v904_v28 = vadd.f32 %v2338_v17, %v903_v26  ;;  %v1032_v29 = vadd.f32 %v2338_v17, %v1031_v27  ;;  %v905_v30 = vpop.f32.mrb[53].mxu0  ;;  %v1033_v31 = vpop.f32.mrb[53].mxu1 }
 0x1b1   : > { %v906_v32 = vpop.f32.mrb[54].mxu0  ;;  %v1034_v33 = vpop.f32.mrb[54].mxu1 }
 0x1b2   : > { %v1080_v34 = vmax.f32 %v904_v28, 0.0  ;;  %v1112_v35 = vmax.f32 %v1032_v29, 0.0  ;;  %v907_v36 = vadd.f32 %v2338_v17, %v906_v32  ;;  %v1035_v37 = vadd.f32 %v2338_v17, %v1034_v33  ;;  %v908_v38 = vpop.f32.mrb[55].mxu0  ;;  %v1036_v39 = vpop.f32.mrb[55].mxu1 }
 0x1b4   : > { %v1741_v40 = vpack.c.bf16 %v1080_v34, %v1080_v34  ;;  %v1773_v41 = vpack.c.bf16 %v1112_v35, %v1112_v35  ;;  %v1081_v42 = vmax.f32 %v907_v36, 0.0  ;;  %v1113_v43 = vmax.f32 %v1035_v37, 0.0 }
 0x1b6   : > { %1401 = vst.msk [vmem:[%s2347_s29 + $0x68] sm:$0xf] %vm1374_vm0, %v1741_v40  ;;  %1433 = vst.msk [vmem:[%s2347_s29 + $0xe8] sm:$0xf] %vm1374_vm0, %v1773_v41  ;;  %v1742_v44 = vpack.c.bf16 %v1081_v42, %v1081_v42  ;;  %v1774_v45 = vpack.c.bf16 %v1113_v43, %v1113_v43 }
 0x1b7   : > { %v911_v46 = vpop.f32.mrb[56].mxu0  ;;  %v1039_v47 = vpop.f32.mrb[56].mxu1 }
 0x1b8   : > { %1402 = vst.msk [vmem:[%s2347_s29 + $0x6c] sm:$0xf] %vm1374_vm0, %v1742_v44  ;;  %1434 = vst.msk [vmem:[%s2347_s29 + $0xec] sm:$0xf] %vm1374_vm0, %v1774_v45  ;;  %v912_v48 = vadd.f32 %v2338_v17, %v911_v46  ;;  %v1040_v49 = vadd.f32 %v2338_v17, %v1039_v47  ;;  %v913_v50 = vpop.f32.mrb[57].mxu0  ;;  %v1041_v51 = vpop.f32.mrb[57].mxu1 }
 0x1b9   : > { %v914_v52 = vpop.f32.mrb[58].mxu0  ;;  %v1042_v53 = vpop.f32.mrb[58].mxu1 }
 0x1ba   : > { %v1082_v54 = vmax.f32 %v912_v48, 0.0  ;;  %v1114_v55 = vmax.f32 %v1040_v49, 0.0  ;;  %v915_v56 = vadd.f32 %v2338_v17, %v914_v52  ;;  %v1043_v57 = vadd.f32 %v2338_v17, %v1042_v53  ;;  %v916_v58 = vpop.f32.mrb[59].mxu0  ;;  %v1044_v59 = vpop.f32.mrb[59].mxu1 }
 0x1bc   : > { %v1743_v60 = vpack.c.bf16 %v1082_v54, %v1082_v54  ;;  %v1775_v61 = vpack.c.bf16 %v1114_v55, %v1114_v55  ;;  %v1083_v62 = vmax.f32 %v915_v56, 0.0  ;;  %v1115_v63 = vmax.f32 %v1043_v57, 0.0 }
 0x1be   : > { %1403 = vst.msk [vmem:[%s2347_s29 + $0x70] sm:$0xf] %vm1374_vm0, %v1743_v60  ;;  %1435 = vst.msk [vmem:[%s2347_s29 + $0xf0] sm:$0xf] %vm1374_vm0, %v1775_v61  ;;  %v1744_v0 = vpack.c.bf16 %v1083_v62, %v1083_v62  ;;  %v1776_v1 = vpack.c.bf16 %v1115_v63, %v1115_v63 }
 0x1bf   : > { %v919_v2 = vpop.f32.mrb[60].mxu0  ;;  %v1047_v3 = vpop.f32.mrb[60].mxu1 }
 0x1c0   : > { %1404 = vst.msk [vmem:[%s2347_s29 + $0x74] sm:$0xf] %vm1374_vm0, %v1744_v0  ;;  %1436 = vst.msk [vmem:[%s2347_s29 + $0xf4] sm:$0xf] %vm1374_vm0, %v1776_v1  ;;  %v920_v4 = vadd.f32 %v2338_v17, %v919_v2  ;;  %v1048_v5 = vadd.f32 %v2338_v17, %v1047_v3  ;;  %v921_v6 = vpop.f32.mrb[61].mxu0  ;;  %v1049_v7 = vpop.f32.mrb[61].mxu1 }
 0x1c1   : > { %v922_v8 = vpop.f32.mrb[62].mxu0  ;;  %v1050_v9 = vpop.f32.mrb[62].mxu1 }
 0x1c2   : > { %v1084_v10 = vmax.f32 %v920_v4, 0.0  ;;  %v1116_v11 = vmax.f32 %v1048_v5, 0.0  ;;  %v923_v12 = vadd.f32 %v2338_v17, %v922_v8  ;;  %v1051_v13 = vadd.f32 %v2338_v17, %v1050_v9  ;;  %v924_v14 = vpop.f32.mrb[63].mxu0  ;;  %v1052_v15 = vpop.f32.mrb[63].mxu1 }
 0x1c4   : > { %v1745_v16 = vpack.c.bf16 %v1084_v10, %v1084_v10  ;;  %v1777_v18 = vpack.c.bf16 %v1116_v11, %v1116_v11  ;;  %v1085_v19 = vmax.f32 %v923_v12, 0.0  ;;  %v1117_v20 = vmax.f32 %v1051_v13, 0.0 }
 0x1c6   : > { %1405 = vst.msk [vmem:[%s2347_s29 + $0x78] sm:$0xf] %vm1374_vm0, %v1745_v16  ;;  %1437 = vst.msk [vmem:[%s2347_s29 + $0xf8] sm:$0xf] %vm1374_vm0, %v1777_v18  ;;  %v1746_v21 = vpack.c.bf16 %v1085_v19, %v1085_v19  ;;  %v1778_v22 = vpack.c.bf16 %v1117_v20, %v1117_v20 }
 0x1c8   : > { %1406 = vst.msk [vmem:[%s2347_s29 + $0x7c] sm:$0xf] %vm1374_vm0, %v1746_v21  ;;  %1438 = vst.msk [vmem:[%s2347_s29 + $0xfc] sm:$0xf] %vm1374_vm0, %v1778_v22 }
 0x1c9 PF: > { %s16_s17 = sadd.s32 1, %s2061_s17   ;;  %s2562_s12 = smov %s2045_s13 }
 0x1ca   : > { %p13_p9 = scmp.ge.s32.totalorder %s16_s17, 6   ;;  %s2563_s13 = smov %s2049_s14 }
 0x1cb   : > { %s2564_s14 = smov %s2136_s24  ;;  %s2565_s15 = smov %s2057_s16 }
 0x1cc   : > { %s2566_s16 = smov %s2568_s19  ;;  %15 = sbr.rel (!%p13_p9) target bundleno = 4 (0x4), region = 78 }
 0x1d3   :  { %1467 = vsyncpa [#allocation3], 1 }
 0x1d4   :  { %1469 = vsyncpa [#allocation3 + $0x1], 1 }

</bundles_post_ra>
